<compile_context>
chip_gen: v7x
topology: tpu7x:2x2x1
jax: 0.10.0
libtpu: 0.0.40
codegen_flags: <defaults>
</compile_context>

<pallas_src>
import functools

import jax
import jax.numpy as jnp
from jax.experimental import pallas as pl
from jax.experimental.pallas import tpu as pltpu


def circular_pad_nchw(x, pad):
    # Reference-only helper (pure JAX); matches CircularPad2d exactly.
    x = jnp.concatenate([x[:, :, -pad:, :], x, x[:, :, :pad, :]], axis=2)
    x = jnp.concatenate([x[:, :, :, -pad:], x, x[:, :, :, :pad]], axis=3)
    return x


def _conv_kernel(x_ref, w_ref, b_ref, o_ref, cols_ref, *, K, H, W, NB, C_pad):
    # x_ref:    (NB, C_pad, H*W)      flat spatial on the lane axis, channels
    #                                 zero-padded to a full sublane tile
    # w_ref:    (C_out, K*K*C_pad)    rows ordered (kh, kw, c_pad)
    # b_ref:    (C_out, 1)
    # o_ref:    (NB, C_out, H*W)
    # cols_ref: (K*K*C_pad, NB*H*W)   VMEM scratch for the im2col matrix
    pad = K // 2
    HW = H * W

    w = w_ref[...]
    b = b_ref[...]

    # Column index of each flat spatial position; wrap masks depend only on
    # dx, so build them once (hoisted out of all loops).
    col = jax.lax.broadcasted_iota(jnp.int32, (1, HW), 1) % W
    wrap_mask = {}
    for dx in range(-pad, pad + 1):
        if dx > 0:
            wrap_mask[dx] = col >= (W - dx)
        elif dx < 0:
            wrap_mask[dx] = col < (-dx)

    for j in range(NB):                      # static unroll over the batch block
        img = x_ref[j]                       # (C_pad, H*W)

        # Column-shifted images: img_dx[dx](y, x) = img[y, (x + dx) mod W].
        # Flat roll by -dx is right except at the |dx| columns whose shift
        # wraps a row; those take the roll corrected by +/-W (one where/dx).
        img_dx = {}
        for dx in range(-pad, pad + 1):
            if dx == 0:
                img_dx[dx] = img
            else:
                base = jnp.roll(img, -dx, axis=1)
                fix_shift = -(dx - W) if dx > 0 else -(dx + W)
                fix = jnp.roll(img, fix_shift, axis=1)
                img_dx[dx] = jnp.where(wrap_mask[dx], fix, base)

        # Each tap is now a pure row-roll (multiple of W) of the dx-shifted
        # image: tap(y, x) = img[(y + dy) mod H, (x + dx) mod W].
        # Stores are (8, 128)-tile aligned: sublane offset tap*C_pad (mult of
        # 8), lane offset j*HW (mult of 128).
        for kh in range(K):
            dy = kh - pad
            for kw in range(K):
                dx = kw - pad
                src = img_dx[dx]
                t_img = src if dy == 0 else jnp.roll(src, -dy * W, axis=1)
                tap = kh * K + kw
                cols_ref[pl.ds(tap * C_pad, C_pad), pl.ds(j * HW, HW)] = t_img

    # Single MXU matmul: (C_out, K*K*C_pad) @ (K*K*C_pad, NB*H*W), f32 acc.
    acc = jnp.dot(w, cols_ref[...], preferred_element_type=jnp.float32) + b

    for j in range(NB):   # lane slices at multiples of H*W (128-aligned here)
        o_ref[j] = acc[:, j * HW:(j + 1) * HW].astype(o_ref.dtype)


def conv_layer_forward(x_nchw, weight_oihw, bias, stride):
    """Forward pass of ConvLayer(in_c, out_c, K, stride) on NCHW input."""
    C_out, C_in, K, _ = weight_oihw.shape
    # TODO(synk): even kernel sizes (output spatial H+2p-K+1 != H) are not
    # supported by the in-kernel circular-roll formulation.
    assert K % 2 == 1, "only odd kernel sizes supported"
    N, _, H, W = x_nchw.shape
    pad = K // 2
    # Roll-plus-mask circular pad assumes a single wrap per tap.
    assert pad < W and pad < H, "kernel半width must be < spatial extent"
    HW = H * W

    # Pad channels to a full 8-sublane tile so all in-kernel im2col slabs are
    # (8, HW)-aligned (MXU cost unchanged; ~4 KiB/image extra DMA).
    C_pad = max(8, ((C_in + 7) // 8) * 8)

    # Grid selection: a 2-step grid only pays off on v7x (2 TensorCores) and
    # only when each half-batch is big enough to cover per-step pipeline
    # overhead (~0.35 us) — require a few hundred KiB per step.  Single-TC
    # v5e/v6e always want one step.
    split_step_bytes = (N // 2) * (C_pad + C_out) * HW * 4
    G = 2 if (N >= 2 and N % 2 == 0 and split_step_bytes >= (256 << 10)) else 1
    NB = N // G
    # NOTE: if this layer is ever scaled up, re-derive (NB, C_pad, HW) /
    # (NB, C_out, HW) block sizes against v7x's 64 MiB VMEM (2 inputs x 2
    # bufs + 2 output bufs + scratch must fit) and raise vmem_limit_bytes.

    # Free layout plumbing only (no pad / transpose HBM passes on activations
    # beyond the tiny channel zero-pad).
    x_flat = x_nchw.reshape(N, C_in, HW)
    x_flat = jnp.pad(x_flat, ((0, 0), (0, C_pad - C_in), (0, 0)))
    # (O,I,Kh,Kw) -> (O,Kh,Kw,I) -> pad I -> (O, Kh*Kw*C_pad): matches im2col
    # row order (kh, kw, c_pad); padded channels contribute exact zeros.
    w_t = jnp.transpose(weight_oihw, (0, 2, 3, 1))
    w_t = jnp.pad(w_t, ((0, 0), (0, 0), (0, 0), (0, C_pad - C_in)))
    w_mat = w_t.reshape(C_out, K * K * C_pad)
    b2d = bias.reshape(C_out, 1)

    kern = functools.partial(_conv_kernel, K=K, H=H, W=W, NB=NB, C_pad=C_pad)

    bytes_accessed = (N * C_pad * HW * 4        # activations in
                      + C_out * K * K * C_pad * 4  # weights
                      + C_out * 4                  # bias
                      + N * C_out * HW * 4)        # activations out
    cost = pl.CostEstimate(
        flops=2 * N * HW * C_out * K * K * C_in,
        transcendentals=0,
        bytes_accessed=bytes_accessed)

    out_flat = pl.pallas_call(
        kern,
        out_shape=jax.ShapeDtypeStruct((N, C_out, HW), x_nchw.dtype),
        grid_spec=pltpu.PrefetchScalarGridSpec(
            num_scalar_prefetch=0,
            grid=(G,),
            in_specs=[
                # NB images per step, spatial flattened on the lane axis
                pl.BlockSpec((NB, C_pad, HW), lambda g: (g, 0, 0)),
                # weights and bias resident every step
                pl.BlockSpec((C_out, K * K * C_pad), lambda g: (0, 0)),
                pl.BlockSpec((C_out, 1), lambda g: (0, 0)),
            ],
            out_specs=pl.BlockSpec((NB, C_out, HW), lambda g: (g, 0, 0)),
            scratch_shapes=[
                pltpu.VMEM((K * K * C_pad, NB * HW), jnp.float32),
            ],
        ),
        compiler_params=pltpu.CompilerParams(
            dimension_semantics=(("parallel",) if G > 1 else ("arbitrary",))),
        cost_estimate=cost,
    )(x_flat, w_mat, b2d)

    out = out_flat.reshape(N, C_out, H, W)   # free reshape; already NCHW
    if stride > 1:
        # TODO(synk): for stride>1, restrict the output columns inside the
        # kernel instead of computing dense and subsampling (stride^2 waste).
        out = out[:, :, ::stride, ::stride]
    return out


if __name__ == "__main__":
    # Module config: ConvLayer(in=4, out=8, kernel=3, stride=1)
    in_channels, out_channels, kernel_size, stride = 4, 8, 3, 1
    N, H, W = 2, 16, 16

    key = jax.random.PRNGKey(0)
    kx, kw, kb = jax.random.split(key, 3)
    x = jax.random.normal(kx, (N, in_channels, H, W), dtype=jnp.float32)
    # Deterministic synthetic parameters (torch Conv2d shapes: OIHW weight, (O,) bias)
    weight = jax.random.normal(
        kw, (out_channels, in_channels, kernel_size, kernel_size),
        dtype=jnp.float32) * 0.1
    bias = jax.random.normal(kb, (out_channels,), dtype=jnp.float32) * 0.1

    out = conv_layer_forward(x, weight, bias, stride)
    out = jax.block_until_ready(out)

    # Reference: explicit circular pad + VALID conv via lax (pure JAX).
    pad = kernel_size // 2
    xp = circular_pad_nchw(x, pad)
    ref = jax.lax.conv_general_dilated(
        xp, weight, window_strides=(stride, stride), padding="VALID",
        dimension_numbers=("NCHW", "OIHW", "NCHW"),
    ) + bias.reshape(1, out_channels, 1, 1)

    assert out.shape == ref.shape, (out.shape, ref.shape)
    assert jnp.allclose(out, ref, atol=1e-4, rtol=1e-4), float(
        jnp.max(jnp.abs(out - ref)))
    print("KERNEL_OK")
</pallas_src>

<mosaic_0001>
module attributes {stable_mosaic.version = 11 : i64} {
  func.func @_conv_kernel(%arg0: i32, %arg1: memref<2x8x256xf32, #tpu.memory_space<vmem>>, %arg2: memref<8x72xf32, #tpu.memory_space<vmem>>, %arg3: memref<8x1xf32, #tpu.memory_space<vmem>>, %arg4: memref<2x8x256xf32, #tpu.memory_space<vmem>>, %arg5: memref<72x512xf32, #tpu.memory_space<vmem>>) attributes {dimension_semantics = [#tpu.dimension_semantics<arbitrary>], iteration_bounds = array<i64: 1>, scalar_prefetch = 0 : i64, scratch_operands = 1 : i64, tpu.core_type = #tpu.core_type<tc>, window_params = [{transform_indices = @transform_0, window_bounds = array<i64: 2, 8, 256>}, {pipeline_mode = #tpu.pipeline_mode<synchronous>, transform_indices = @transform_1, window_bounds = array<i64: 8, 72>}, {pipeline_mode = #tpu.pipeline_mode<synchronous>, transform_indices = @transform_2, window_bounds = array<i64: 8, 1>}, {transform_indices = @transform_3, window_bounds = array<i64: 2, 8, 256>}]} {
    %c0 = arith.constant 0 : index
    %c0_0 = arith.constant 0 : index
    %0 = vector.load %arg2[%c0, %c0_0] : memref<8x72xf32, #tpu.memory_space<vmem>>, vector<8x72xf32>
    %c0_1 = arith.constant 0 : index
    %c0_2 = arith.constant 0 : index
    %1 = vector.load %arg3[%c0_1, %c0_2] : memref<8x1xf32, #tpu.memory_space<vmem>>, vector<8x1xf32>
    %2 = tpu.iota {dimensions = array<i32: 1>} : vector<1x256xi32>
    %c16_i32 = arith.constant 16 : i32
    %c0_i32 = arith.constant 0 : i32
    %3 = arith.cmpi eq, %c16_i32, %c0_i32 : i32
    %c1_i32 = arith.constant 1 : i32
    %4 = arith.select %3, %c1_i32, %c16_i32 : i32
    %5 = vector.broadcast %4 : i32 to vector<1x256xi32>
    %6 = arith.remsi %2, %5 : vector<1x256xi32>
    %c0_i32_3 = arith.constant 0 : i32
    %7 = vector.broadcast %c0_i32_3 : i32 to vector<1x256xi32>
    %8 = arith.cmpi ne, %6, %7 : vector<1x256xi32>
    %c0_i32_4 = arith.constant 0 : i32
    %9 = vector.broadcast %c0_i32_4 : i32 to vector<1x256xi32>
    %10 = arith.cmpi slt, %6, %9 : vector<1x256xi32>
    %c0_i32_5 = arith.constant 0 : i32
    %11 = arith.cmpi slt, %4, %c0_i32_5 : i32
    %12 = vector.broadcast %11 : i1 to vector<1x256xi1>
    %13 = vector.broadcast %12 : vector<1x256xi1> to vector<1x256xi1>
    %14 = arith.xori %10, %13 : vector<1x256xi1>
    %15 = arith.andi %14, %8 : vector<1x256xi1>
    %16 = vector.broadcast %4 : i32 to vector<1x256xi32>
    %17 = arith.addi %6, %16 : vector<1x256xi32>
    %18 = arith.select %15, %17, %6 : vector<1x256xi1>, vector<1x256xi32>
    %c1_i32_6 = arith.constant 1 : i32
    %19 = vector.broadcast %c1_i32_6 : i32 to vector<1x256xi32>
    %20 = arith.cmpi slt, %18, %19 : vector<1x256xi32>
    %c15_i32 = arith.constant 15 : i32
    %21 = vector.broadcast %c15_i32 : i32 to vector<1x256xi32>
    %22 = arith.cmpi sge, %18, %21 : vector<1x256xi32>
    %c0_7 = arith.constant 0 : index
    %c0_8 = arith.constant 0 : index
    %c0_9 = arith.constant 0 : index
    %23 = vector.load %arg1[%c0_7, %c0_8, %c0_9] : memref<2x8x256xf32, #tpu.memory_space<vmem>>, vector<1x8x256xf32>
    %24 = vector.shape_cast %23 : vector<1x8x256xf32> to vector<8x256xf32>
    %25 = vector.extract_strided_slice %24 {offsets = [0, 255], sizes = [8, 1], strides = [1, 1]} : vector<8x256xf32> to vector<8x1xf32>
    %26 = vector.extract_strided_slice %24 {offsets = [0, 0], sizes = [8, 255], strides = [1, 1]} : vector<8x256xf32> to vector<8x255xf32>
    %27 = tpu.concatenate %25, %26 in 1 : vector<8x1xf32>, vector<8x255xf32> -> vector<8x256xf32>
    %28 = vector.extract_strided_slice %24 {offsets = [0, 15], sizes = [8, 241], strides = [1, 1]} : vector<8x256xf32> to vector<8x241xf32>
    %29 = vector.extract_strided_slice %24 {offsets = [0, 0], sizes = [8, 15], strides = [1, 1]} : vector<8x256xf32> to vector<8x15xf32>
    %30 = tpu.concatenate %28, %29 in 1 : vector<8x241xf32>, vector<8x15xf32> -> vector<8x256xf32>
    %31 = vector.shape_cast %20 : vector<1x256xi1> to vector<1x256xi1>
    %32 = vector.broadcast %31 : vector<1x256xi1> to vector<8x256xi1>
    %33 = arith.select %32, %30, %27 : vector<8x256xi1>, vector<8x256xf32>
    %34 = vector.extract_strided_slice %24 {offsets = [0, 1], sizes = [8, 255], strides = [1, 1]} : vector<8x256xf32> to vector<8x255xf32>
    %35 = vector.extract_strided_slice %24 {offsets = [0, 0], sizes = [8, 1], strides = [1, 1]} : vector<8x256xf32> to vector<8x1xf32>
    %36 = tpu.concatenate %34, %35 in 1 : vector<8x255xf32>, vector<8x1xf32> -> vector<8x256xf32>
    %37 = vector.extract_strided_slice %24 {offsets = [0, 241], sizes = [8, 15], strides = [1, 1]} : vector<8x256xf32> to vector<8x15xf32>
    %38 = vector.extract_strided_slice %24 {offsets = [0, 0], sizes = [8, 241], strides = [1, 1]} : vector<8x256xf32> to vector<8x241xf32>
    %39 = tpu.concatenate %37, %38 in 1 : vector<8x15xf32>, vector<8x241xf32> -> vector<8x256xf32>
    %40 = vector.shape_cast %22 : vector<1x256xi1> to vector<1x256xi1>
    %41 = vector.broadcast %40 : vector<1x256xi1> to vector<8x256xi1>
    %42 = arith.select %41, %39, %36 : vector<8x256xi1>, vector<8x256xf32>
    %43 = vector.extract_strided_slice %33 {offsets = [0, 240], sizes = [8, 16], strides = [1, 1]} : vector<8x256xf32> to vector<8x16xf32>
    %44 = vector.extract_strided_slice %33 {offsets = [0, 0], sizes = [8, 240], strides = [1, 1]} : vector<8x256xf32> to vector<8x240xf32>
    %45 = tpu.concatenate %43, %44 in 1 : vector<8x16xf32>, vector<8x240xf32> -> vector<8x256xf32>
    %c0_10 = arith.constant 0 : index
    %c0_11 = arith.constant 0 : index
    %46 = vector.load %arg5[%c0_10, %c0_11] : memref<72x512xf32, #tpu.memory_space<vmem>>, vector<8x256xf32>
    tpu.vector_store %arg5[%c0_10, %c0_11], %45 {strides = array<i32>} : memref<72x512xf32, #tpu.memory_space<vmem>>, vector<8x256xf32>,
    %47 = vector.extract_strided_slice %24 {offsets = [0, 240], sizes = [8, 16], strides = [1, 1]} : vector<8x256xf32> to vector<8x16xf32>
    %48 = vector.extract_strided_slice %24 {offsets = [0, 0], sizes = [8, 240], strides = [1, 1]} : vector<8x256xf32> to vector<8x240xf32>
    %49 = tpu.concatenate %47, %48 in 1 : vector<8x16xf32>, vector<8x240xf32> -> vector<8x256xf32>
    %c8 = arith.constant 8 : index
    %c0_12 = arith.constant 0 : index
    %50 = vector.load %arg5[%c8, %c0_12] : memref<72x512xf32, #tpu.memory_space<vmem>>, vector<8x256xf32>
    tpu.vector_store %arg5[%c8, %c0_12], %49 {strides = array<i32>} : memref<72x512xf32, #tpu.memory_space<vmem>>, vector<8x256xf32>,
    %51 = vector.extract_strided_slice %42 {offsets = [0, 240], sizes = [8, 16], strides = [1, 1]} : vector<8x256xf32> to vector<8x16xf32>
    %52 = vector.extract_strided_slice %42 {offsets = [0, 0], sizes = [8, 240], strides = [1, 1]} : vector<8x256xf32> to vector<8x240xf32>
    %53 = tpu.concatenate %51, %52 in 1 : vector<8x16xf32>, vector<8x240xf32> -> vector<8x256xf32>
    %c16 = arith.constant 16 : index
    %c0_13 = arith.constant 0 : index
    %54 = vector.load %arg5[%c16, %c0_13] : memref<72x512xf32, #tpu.memory_space<vmem>>, vector<8x256xf32>
    tpu.vector_store %arg5[%c16, %c0_13], %53 {strides = array<i32>} : memref<72x512xf32, #tpu.memory_space<vmem>>, vector<8x256xf32>,
    %c24 = arith.constant 24 : index
    %c0_14 = arith.constant 0 : index
    %55 = vector.load %arg5[%c24, %c0_14] : memref<72x512xf32, #tpu.memory_space<vmem>>, vector<8x256xf32>
    tpu.vector_store %arg5[%c24, %c0_14], %33 {strides = array<i32>} : memref<72x512xf32, #tpu.memory_space<vmem>>, vector<8x256xf32>,
    %c32 = arith.constant 32 : index
    %c0_15 = arith.constant 0 : index
    %56 = vector.load %arg5[%c32, %c0_15] : memref<72x512xf32, #tpu.memory_space<vmem>>, vector<8x256xf32>
    tpu.vector_store %arg5[%c32, %c0_15], %24 {strides = array<i32>} : memref<72x512xf32, #tpu.memory_space<vmem>>, vector<8x256xf32>,
    %c40 = arith.constant 40 : index
    %c0_16 = arith.constant 0 : index
    %57 = vector.load %arg5[%c40, %c0_16] : memref<72x512xf32, #tpu.memory_space<vmem>>, vector<8x256xf32>
    tpu.vector_store %arg5[%c40, %c0_16], %42 {strides = array<i32>} : memref<72x512xf32, #tpu.memory_space<vmem>>, vector<8x256xf32>,
    %58 = vector.extract_strided_slice %33 {offsets = [0, 16], sizes = [8, 240], strides = [1, 1]} : vector<8x256xf32> to vector<8x240xf32>
    %59 = vector.extract_strided_slice %33 {offsets = [0, 0], sizes = [8, 16], strides = [1, 1]} : vector<8x256xf32> to vector<8x16xf32>
    %60 = tpu.concatenate %58, %59 in 1 : vector<8x240xf32>, vector<8x16xf32> -> vector<8x256xf32>
    %c48 = arith.constant 48 : index
    %c0_17 = arith.constant 0 : index
    %61 = vector.load %arg5[%c48, %c0_17] : memref<72x512xf32, #tpu.memory_space<vmem>>, vector<8x256xf32>
    tpu.vector_store %arg5[%c48, %c0_17], %60 {strides = array<i32>} : memref<72x512xf32, #tpu.memory_space<vmem>>, vector<8x256xf32>,
    %62 = vector.extract_strided_slice %24 {offsets = [0, 16], sizes = [8, 240], strides = [1, 1]} : vector<8x256xf32> to vector<8x240xf32>
    %63 = vector.extract_strided_slice %24 {offsets = [0, 0], sizes = [8, 16], strides = [1, 1]} : vector<8x256xf32> to vector<8x16xf32>
    %64 = tpu.concatenate %62, %63 in 1 : vector<8x240xf32>, vector<8x16xf32> -> vector<8x256xf32>
    %c56 = arith.constant 56 : index
    %c0_18 = arith.constant 0 : index
    %65 = vector.load %arg5[%c56, %c0_18] : memref<72x512xf32, #tpu.memory_space<vmem>>, vector<8x256xf32>
    tpu.vector_store %arg5[%c56, %c0_18], %64 {strides = array<i32>} : memref<72x512xf32, #tpu.memory_space<vmem>>, vector<8x256xf32>,
    %66 = vector.extract_strided_slice %42 {offsets = [0, 16], sizes = [8, 240], strides = [1, 1]} : vector<8x256xf32> to vector<8x240xf32>
    %67 = vector.extract_strided_slice %42 {offsets = [0, 0], sizes = [8, 16], strides = [1, 1]} : vector<8x256xf32> to vector<8x16xf32>
    %68 = tpu.concatenate %66, %67 in 1 : vector<8x240xf32>, vector<8x16xf32> -> vector<8x256xf32>
    %c64 = arith.constant 64 : index
    %c0_19 = arith.constant 0 : index
    %69 = vector.load %arg5[%c64, %c0_19] : memref<72x512xf32, #tpu.memory_space<vmem>>, vector<8x256xf32>
    tpu.vector_store %arg5[%c64, %c0_19], %68 {strides = array<i32>} : memref<72x512xf32, #tpu.memory_space<vmem>>, vector<8x256xf32>,
    %c1 = arith.constant 1 : index
    %c0_20 = arith.constant 0 : index
    %c0_21 = arith.constant 0 : index
    %70 = vector.load %arg1[%c1, %c0_20, %c0_21] : memref<2x8x256xf32, #tpu.memory_space<vmem>>, vector<1x8x256xf32>
    %71 = vector.shape_cast %70 : vector<1x8x256xf32> to vector<8x256xf32>
    %72 = vector.extract_strided_slice %71 {offsets = [0, 255], sizes = [8, 1], strides = [1, 1]} : vector<8x256xf32> to vector<8x1xf32>
    %73 = vector.extract_strided_slice %71 {offsets = [0, 0], sizes = [8, 255], strides = [1, 1]} : vector<8x256xf32> to vector<8x255xf32>
    %74 = tpu.concatenate %72, %73 in 1 : vector<8x1xf32>, vector<8x255xf32> -> vector<8x256xf32>
    %75 = vector.extract_strided_slice %71 {offsets = [0, 15], sizes = [8, 241], strides = [1, 1]} : vector<8x256xf32> to vector<8x241xf32>
    %76 = vector.extract_strided_slice %71 {offsets = [0, 0], sizes = [8, 15], strides = [1, 1]} : vector<8x256xf32> to vector<8x15xf32>
    %77 = tpu.concatenate %75, %76 in 1 : vector<8x241xf32>, vector<8x15xf32> -> vector<8x256xf32>
    %78 = vector.shape_cast %20 : vector<1x256xi1> to vector<1x256xi1>
    %79 = vector.broadcast %78 : vector<1x256xi1> to vector<8x256xi1>
    %80 = arith.select %79, %77, %74 : vector<8x256xi1>, vector<8x256xf32>
    %81 = vector.extract_strided_slice %71 {offsets = [0, 1], sizes = [8, 255], strides = [1, 1]} : vector<8x256xf32> to vector<8x255xf32>
    %82 = vector.extract_strided_slice %71 {offsets = [0, 0], sizes = [8, 1], strides = [1, 1]} : vector<8x256xf32> to vector<8x1xf32>
    %83 = tpu.concatenate %81, %82 in 1 : vector<8x255xf32>, vector<8x1xf32> -> vector<8x256xf32>
    %84 = vector.extract_strided_slice %71 {offsets = [0, 241], sizes = [8, 15], strides = [1, 1]} : vector<8x256xf32> to vector<8x15xf32>
    %85 = vector.extract_strided_slice %71 {offsets = [0, 0], sizes = [8, 241], strides = [1, 1]} : vector<8x256xf32> to vector<8x241xf32>
    %86 = tpu.concatenate %84, %85 in 1 : vector<8x15xf32>, vector<8x241xf32> -> vector<8x256xf32>
    %87 = vector.shape_cast %22 : vector<1x256xi1> to vector<1x256xi1>
    %88 = vector.broadcast %87 : vector<1x256xi1> to vector<8x256xi1>
    %89 = arith.select %88, %86, %83 : vector<8x256xi1>, vector<8x256xf32>
    %90 = vector.extract_strided_slice %80 {offsets = [0, 240], sizes = [8, 16], strides = [1, 1]} : vector<8x256xf32> to vector<8x16xf32>
    %91 = vector.extract_strided_slice %80 {offsets = [0, 0], sizes = [8, 240], strides = [1, 1]} : vector<8x256xf32> to vector<8x240xf32>
    %92 = tpu.concatenate %90, %91 in 1 : vector<8x16xf32>, vector<8x240xf32> -> vector<8x256xf32>
    %c0_22 = arith.constant 0 : index
    %c256 = arith.constant 256 : index
    %93 = vector.load %arg5[%c0_22, %c256] : memref<72x512xf32, #tpu.memory_space<vmem>>, vector<8x256xf32>
    tpu.vector_store %arg5[%c0_22, %c256], %92 {strides = array<i32>} : memref<72x512xf32, #tpu.memory_space<vmem>>, vector<8x256xf32>,
    %94 = vector.extract_strided_slice %71 {offsets = [0, 240], sizes = [8, 16], strides = [1, 1]} : vector<8x256xf32> to vector<8x16xf32>
    %95 = vector.extract_strided_slice %71 {offsets = [0, 0], sizes = [8, 240], strides = [1, 1]} : vector<8x256xf32> to vector<8x240xf32>
    %96 = tpu.concatenate %94, %95 in 1 : vector<8x16xf32>, vector<8x240xf32> -> vector<8x256xf32>
    %c8_23 = arith.constant 8 : index
    %c256_24 = arith.constant 256 : index
    %97 = vector.load %arg5[%c8_23, %c256_24] : memref<72x512xf32, #tpu.memory_space<vmem>>, vector<8x256xf32>
    tpu.vector_store %arg5[%c8_23, %c256_24], %96 {strides = array<i32>} : memref<72x512xf32, #tpu.memory_space<vmem>>, vector<8x256xf32>,
    %98 = vector.extract_strided_slice %89 {offsets = [0, 240], sizes = [8, 16], strides = [1, 1]} : vector<8x256xf32> to vector<8x16xf32>
    %99 = vector.extract_strided_slice %89 {offsets = [0, 0], sizes = [8, 240], strides = [1, 1]} : vector<8x256xf32> to vector<8x240xf32>
    %100 = tpu.concatenate %98, %99 in 1 : vector<8x16xf32>, vector<8x240xf32> -> vector<8x256xf32>
    %c16_25 = arith.constant 16 : index
    %c256_26 = arith.constant 256 : index
    %101 = vector.load %arg5[%c16_25, %c256_26] : memref<72x512xf32, #tpu.memory_space<vmem>>, vector<8x256xf32>
    tpu.vector_store %arg5[%c16_25, %c256_26], %100 {strides = array<i32>} : memref<72x512xf32, #tpu.memory_space<vmem>>, vector<8x256xf32>,
    %c24_27 = arith.constant 24 : index
    %c256_28 = arith.constant 256 : index
    %102 = vector.load %arg5[%c24_27, %c256_28] : memref<72x512xf32, #tpu.memory_space<vmem>>, vector<8x256xf32>
    tpu.vector_store %arg5[%c24_27, %c256_28], %80 {strides = array<i32>} : memref<72x512xf32, #tpu.memory_space<vmem>>, vector<8x256xf32>,
    %c32_29 = arith.constant 32 : index
    %c256_30 = arith.constant 256 : index
    %103 = vector.load %arg5[%c32_29, %c256_30] : memref<72x512xf32, #tpu.memory_space<vmem>>, vector<8x256xf32>
    tpu.vector_store %arg5[%c32_29, %c256_30], %71 {strides = array<i32>} : memref<72x512xf32, #tpu.memory_space<vmem>>, vector<8x256xf32>,
    %c40_31 = arith.constant 40 : index
    %c256_32 = arith.constant 256 : index
    %104 = vector.load %arg5[%c40_31, %c256_32] : memref<72x512xf32, #tpu.memory_space<vmem>>, vector<8x256xf32>
    tpu.vector_store %arg5[%c40_31, %c256_32], %89 {strides = array<i32>} : memref<72x512xf32, #tpu.memory_space<vmem>>, vector<8x256xf32>,
    %105 = vector.extract_strided_slice %80 {offsets = [0, 16], sizes = [8, 240], strides = [1, 1]} : vector<8x256xf32> to vector<8x240xf32>
    %106 = vector.extract_strided_slice %80 {offsets = [0, 0], sizes = [8, 16], strides = [1, 1]} : vector<8x256xf32> to vector<8x16xf32>
    %107 = tpu.concatenate %105, %106 in 1 : vector<8x240xf32>, vector<8x16xf32> -> vector<8x256xf32>
    %c48_33 = arith.constant 48 : index
    %c256_34 = arith.constant 256 : index
    %108 = vector.load %arg5[%c48_33, %c256_34] : memref<72x512xf32, #tpu.memory_space<vmem>>, vector<8x256xf32>
    tpu.vector_store %arg5[%c48_33, %c256_34], %107 {strides = array<i32>} : memref<72x512xf32, #tpu.memory_space<vmem>>, vector<8x256xf32>,
    %109 = vector.extract_strided_slice %71 {offsets = [0, 16], sizes = [8, 240], strides = [1, 1]} : vector<8x256xf32> to vector<8x240xf32>
    %110 = vector.extract_strided_slice %71 {offsets = [0, 0], sizes = [8, 16], strides = [1, 1]} : vector<8x256xf32> to vector<8x16xf32>
    %111 = tpu.concatenate %109, %110 in 1 : vector<8x240xf32>, vector<8x16xf32> -> vector<8x256xf32>
    %c56_35 = arith.constant 56 : index
    %c256_36 = arith.constant 256 : index
    %112 = vector.load %arg5[%c56_35, %c256_36] : memref<72x512xf32, #tpu.memory_space<vmem>>, vector<8x256xf32>
    tpu.vector_store %arg5[%c56_35, %c256_36], %111 {strides = array<i32>} : memref<72x512xf32, #tpu.memory_space<vmem>>, vector<8x256xf32>,
    %113 = vector.extract_strided_slice %89 {offsets = [0, 16], sizes = [8, 240], strides = [1, 1]} : vector<8x256xf32> to vector<8x240xf32>
    %114 = vector.extract_strided_slice %89 {offsets = [0, 0], sizes = [8, 16], strides = [1, 1]} : vector<8x256xf32> to vector<8x16xf32>
    %115 = tpu.concatenate %113, %114 in 1 : vector<8x240xf32>, vector<8x16xf32> -> vector<8x256xf32>
    %c64_37 = arith.constant 64 : index
    %c256_38 = arith.constant 256 : index
    %116 = vector.load %arg5[%c64_37, %c256_38] : memref<72x512xf32, #tpu.memory_space<vmem>>, vector<8x256xf32>
    tpu.vector_store %arg5[%c64_37, %c256_38], %115 {strides = array<i32>} : memref<72x512xf32, #tpu.memory_space<vmem>>, vector<8x256xf32>,
    %c0_39 = arith.constant 0 : index
    %c0_40 = arith.constant 0 : index
    %117 = vector.load %arg5[%c0_39, %c0_40] : memref<72x512xf32, #tpu.memory_space<vmem>>, vector<72x512xf32>
    %cst = arith.constant dense<0.000000e+00> : vector<8x512xf32>
    %118 = tpu.matmul %0, %117, %cst {dimension_numbers = #tpu.dot_dimension_numbers<[1], [0], [0], [1], [0, 0, 1, 1], [], []>} : vector<8x72xf32>, vector<72x512xf32>, vector<8x512xf32> -> vector<8x512xf32>
    %119 = vector.broadcast %1 : vector<8x1xf32> to vector<8x512xf32>
    %120 = arith.addf %118, %119 : vector<8x512xf32>
    %121 = vector.extract_strided_slice %120 {offsets = [0, 0], sizes = [8, 256], strides = [1, 1]} : vector<8x512xf32> to vector<8x256xf32>
    %c0_41 = arith.constant 0 : index
    %c0_42 = arith.constant 0 : index
    %c0_43 = arith.constant 0 : index
    %122 = vector.load %arg4[%c0_41, %c0_42, %c0_43] : memref<2x8x256xf32, #tpu.memory_space<vmem>>, vector<1x8x256xf32>
    %123 = vector.shape_cast %122 : vector<1x8x256xf32> to vector<8x256xf32>
    %124 = vector.shape_cast %121 : vector<8x256xf32> to vector<1x8x256xf32>
    tpu.vector_store %arg4[%c0_41, %c0_42, %c0_43], %124 {strides = array<i32>} : memref<2x8x256xf32, #tpu.memory_space<vmem>>, vector<1x8x256xf32>,
    %125 = vector.extract_strided_slice %120 {offsets = [0, 256], sizes = [8, 256], strides = [1, 1]} : vector<8x512xf32> to vector<8x256xf32>
    %c1_44 = arith.constant 1 : index
    %c0_45 = arith.constant 0 : index
    %c0_46 = arith.constant 0 : index
    %126 = vector.load %arg4[%c1_44, %c0_45, %c0_46] : memref<2x8x256xf32, #tpu.memory_space<vmem>>, vector<1x8x256xf32>
    %127 = vector.shape_cast %126 : vector<1x8x256xf32> to vector<8x256xf32>
    %128 = vector.shape_cast %125 : vector<8x256xf32> to vector<1x8x256xf32>
    tpu.vector_store %arg4[%c1_44, %c0_45, %c0_46], %128 {strides = array<i32>} : memref<2x8x256xf32, #tpu.memory_space<vmem>>, vector<1x8x256xf32>,
    return
  }
  func.func @transform_0(%arg0: i32) -> (i32, i32, i32) {
    %c0_i32 = arith.constant 0 : i32
    %c0_i32_0 = arith.constant 0 : i32
    %c0_i32_1 = arith.constant 0 : i32
    return %arg0, %c0_i32, %c0_i32_0 : i32, i32, i32
  }
  func.func @transform_1(%arg0: i32) -> (i32, i32) {
    %c0_i32 = arith.constant 0 : i32
    %c0_i32_0 = arith.constant 0 : i32
    %c0_i32_1 = arith.constant 0 : i32
    return %c0_i32, %c0_i32_0 : i32, i32
  }
  func.func @transform_2(%arg0: i32) -> (i32, i32) {
    %c0_i32 = arith.constant 0 : i32
    %c0_i32_0 = arith.constant 0 : i32
    %c0_i32_1 = arith.constant 0 : i32
    return %c0_i32, %c0_i32_0 : i32, i32
  }
  func.func @transform_3(%arg0: i32) -> (i32, i32, i32) {
    %c0_i32 = arith.constant 0 : i32
    %c0_i32_0 = arith.constant 0 : i32
    %c0_i32_1 = arith.constant 0 : i32
    return %arg0, %c0_i32, %c0_i32_0 : i32, i32, i32
  }
}

</mosaic_0001>

<bundles_post_ra>
// kernel: tpu_custom_call.1
= control target key start
LH: loop header
LB: loop body
LE: loop exit
PB: predicated region body
PF: predicated region fallthrough
CT: control target
= control target key end

     0   :  { %8 = vsyncpa [#allocation4], 0  ;;  %s895_s0 = inlined_call_operand.hbm [shape: f32[2,8,256], index: 0, kind: input, shape index: {}]   ;;  %s896_s1 = inlined_call_operand.vmem [shape: f32[8,72], index: 1, kind: input, shape index: {}]   ;;  %s897_s2 = inlined_call_operand.vmem [shape: f32[8,1], index: 2, kind: input, shape index: {}]   ;;  %s898_s3 = inlined_call_operand.hbm [shape: f32[2,8,256], index: 3, kind: output, shape index: {}]  }
   0x1   :  { %9 = vsyncpa [#allocation5], 0  ;;  %s690_s12 = smov [#allocation3]   ;;  %s642_s16 = scalar_lea.hbm %s895_s0, 512 }
   0x2   :  { %s15_s13 = sshll.u32 %s690_s12, 4  ;;  %p643_p0 = scmp.ne.s32.totalorder %s895_s0, %s642_s16  ;;  %s16_s13 = int_to_ptr.vmem [resolvable:$true] %s15_s13 }
   0x3   :  { %p646_p1 = scmp.lt.u32.totalorder %s642_s16, %s895_s0 }
   0x5   :  { %p648_p2 = pnand %p646_p1, %p643_p0 }
   0x7   :  { %651 = shalt.err (!%p648_p2)
}
   0x8   :  { %s652_s21 = scalar_lea.vmem %s16_s13, 512  ;;  %p657_p4 = scmp.lt.s32.totalorder %s16_s13, %s16_s13 }
   0x9   :  { %p653_p3 = scmp.ne.s32.totalorder %s16_s13, %s652_s21  ;;  %p658_p5 = scmp.lt.s32.totalorder %s652_s21, %s652_s21 }
   0xb   :  { %p659_p6 = por %p658_p5, %p657_p4 }
   0xd   :  { %p660_p7 = pnand %p659_p6, %p653_p3 }
   0xf   :  { %663 = shalt.err (!%p660_p7)
}
  0x10   :  { %s691_s22 = smov 256   ;;  %s692_s23 = smov 16  }
  0x11   :  { %21 = dma.hbm_to_vmem [thread:$0]  %s895_s0, 512, %s16_s13, [#allocation4], %s691_s22, %s691_s22, %s692_s23  }
  0x12   :  { %686 = dma.done.wait [#allocation4], 512  }
  0x13   :  { %687 = vsyncadd [#allocation4], 4294966784  ;;  %v736_v0 = vld [vmem:[#allocation3 + $0x10] sm:$0xff]  ;;  %v738_v1 = vld [vmem:[#allocation3 + $0x18] sm:$0xff]  ;;  %s693_s26 = smov 1   ;;  %s694_s0 = smov 113   ;;  %v31_v8 = vlaneseq }
  0x14   :  { %v740_v2 = vld [vmem:[#allocation3] sm:$0xff]  ;;  %v581_v3 = vpack.i.bf16 %v736_v0, %v738_v1  ;;  %v744_v4 = vld [vmem:[#allocation3 + $0x8] sm:$0xff]  ;;  %v750_v6 = vpack.i.bf16 %v738_v1, %v736_v0  ;;  %s695_s27 = smov 127   ;;  %s696_s28 = smov 15   ;;  %vm71_vm0 = vcmask 7168   ;;  %vm80_vm1 = vcmask 924672  }
  0x15   :  { %v571_v5 = vpack.i.bf16 %v740_v2, %v744_v4  ;;  %v754_v7 = vpack.i.bf16 %v744_v4, %v740_v2  ;;  %v32_v9 = vand.u32 127, %v31_v8  ;;  %vm96_vm4 = vcmask 1039360   ;;  %s697_s29 = smov 112  }
  0x16   :  { %582 = vrot.lane.b32.xlu1 %v581_v3, %s693_s26  ;;  %vm107_vm5 = vcmask 121856   ;;  %v699_v8 = vmov 0   ;;  %vm125_vm8 = vcmask 130048   ;;  %vm166_vm9 = vcmask 916480  }
  0x17   :  { %572 = vrot.lane.b32.xlu0 %v571_v5, %s693_s26  ;;  %v33_v10 = vadd.s32 128, %v32_v9  ;;  %v38_v13 = vand.u32 15, %v32_v9  ;;  %v30_v9 = vld [vmem:[%s897_s2] sm:$0xff]  ;;  %vm358_vm10 = vcmask 588800  }
  0x18   :  { %641 = vset.pattern.permute.xlu0 %v699_v8 }
  0x19   :  { %v45_v14 = vand.u32 15, %v33_v10  ;;  %vm58_vm2 = vcmp.lt.s32.totalorder %v38_v13, 1  ;;  %vm787_vm6 = vcmp.ge.s32.totalorder %v38_v13, 15 }
  0x1a   :  { %587 = vrot.lane.b32.xlu1 %v750_v6, %s694_s0 }
  0x1b   :  { %577 = vrot.lane.b32.xlu0 %v754_v7, %s694_s0  ;;  %vm59_vm3 = vcmp.lt.s32.totalorder %v45_v14, 1  ;;  %vm791_vm7 = vcmp.ge.s32.totalorder %v45_v14, 15 }
  0x1e   :  { %94 = vrot.lane.b32.xlu1 %v744_v4, %s695_s27 }
  0x1f   :  { %92 = vrot.lane.b32.xlu0 %v740_v2, %s695_s27 }
  0x22   :  { %105 = vrot.lane.b32.xlu1 %v740_v2, %s696_s28 }
  0x23   :  { %102 = vrot.lane.b32.xlu0 %v744_v4, %s696_s28 }
  0x26   :  { %223 = vrot.lane.b32.xlu1 %v738_v1, %s695_s27 }
  0x27   :  { %221 = vrot.lane.b32.xlu0 %v736_v0, %s695_s27 }
  0x2a   :  { %233 = vrot.lane.b32.xlu1 %v736_v0, %s696_s28 }
  0x2b   :  { %230 = vrot.lane.b32.xlu0 %v738_v1, %s696_s28 }
  0x2e   :  { %592 = vrot.lane.b32.xlu1 %v571_v5, %s692_s23  ;;  %v698_v5 = vmov 0.0  }
  0x2f   :  { %426 = vmatprep.mubr.f32.mxu0 %v698_v5  ;;  %497 = vmatprep.mubr.f32.mxu1 %v698_v5 }
  0x32   :  { %597 = vrot.lane.b32.xlu1 %v581_v3, %s692_s23 }
  0x88   :  { %v583_v11 = vpop.permute.xlu1 %582 }
  0x89   :  { %v573_v12 = vpop.permute.xlu0 %572  ;;  %v585_v18 = vunpack.i.h.bf16 %v583_v11  ;;  %v584_v19 = vunpack.i.l.bf16 %v583_v11 }
  0x8a   :  { %v575_v15 = vunpack.i.h.bf16 %v573_v12  ;;  %v574_v16 = vunpack.i.l.bf16 %v573_v12 }
  0x8b   :  { %v206_v35 = vsel %vm71_vm0, %v585_v18, %v584_v19  ;;  %v209_v36 = vsel %vm71_vm0, %v584_v19, %v585_v18 }
  0x8c   :  { %v588_v17 = vpop.permute.xlu1 %587  ;;  %v72_v28 = vsel %vm71_vm0, %v575_v15, %v574_v16  ;;  %v75_v29 = vsel %vm71_vm0, %v574_v16, %v575_v15 }
  0x8d   :  { %v590_v20 = vunpack.i.h.bf16 %v588_v17  ;;  %v589_v21 = vunpack.i.l.bf16 %v588_v17  ;;  %v578_v22 = vpop.permute.xlu0 %577 }
  0x8e   :  { %v580_v23 = vunpack.i.h.bf16 %v578_v22  ;;  %v579_v24 = vunpack.i.l.bf16 %v578_v22 }
  0x8f   :  { %v214_v25 = vsel %vm80_vm1, %v589_v21, %v590_v20  ;;  %v218_v26 = vsel %vm80_vm1, %v590_v20, %v589_v21 }
  0x90   :  { %v95_v27 = vpop.permute.xlu1 %94  ;;  %v81_v30 = vsel %vm80_vm1, %v579_v24, %v580_v23  ;;  %v85_v31 = vsel %vm80_vm1, %v580_v23, %v579_v24  ;;  %v782_v38 = vsel %vm58_vm2, %v214_v25, %v209_v36  ;;  %v784_v39 = vsel %vm59_vm3, %v218_v26, %v206_v35 }
  0x91   :  { %v93_v32 = vpop.permute.xlu0 %92  ;;  %v774_v33 = vsel %vm58_vm2, %v81_v30, %v75_v29  ;;  %v776_v34 = vsel %vm59_vm3, %v85_v31, %v72_v28  ;;  %v606_v44 = vpack.i.bf16 %v782_v38, %v784_v39  ;;  %v636_v3 = vpack.i.bf16 %v784_v39, %v782_v38 }
  0x92   :  { %v601_v37 = vpack.i.bf16 %v774_v33, %v776_v34  ;;  %v97_v45 = vsel %vm96_vm4, %v93_v32, %v95_v27  ;;  %v101_v46 = vsel %vm96_vm4, %v95_v27, %v93_v32  ;;  %v631_v56 = vpack.i.bf16 %v776_v34, %v774_v33 }
  0x94   :  { %602 = vrot.lane.b32.xlu0 %v601_v37, %s692_s23  ;;  %v106_v40 = vpop.permute.xlu1 %105 }
  0x95   :  { %v103_v43 = vpop.permute.xlu0 %102 }
  0x96   :  { %v108_v47 = vsel %vm107_vm5, %v106_v40, %v103_v43  ;;  %v111_v48 = vsel %vm107_vm5, %v103_v43, %v106_v40 }
  0x97   :  { %v803_v49 = vsel %vm787_vm6, %v111_v48, %v97_v45  ;;  %v807_v50 = vsel %vm791_vm7, %v108_v47, %v101_v46 }
  0x98   :  { %607 = vrot.lane.b32.xlu0 %v606_v44, %s692_s23  ;;  %v224_v51 = vpop.permute.xlu1 %223  ;;  %v611_v53 = vpack.i.bf16 %v803_v49, %v807_v50  ;;  %v536_v45 = vpack.c.bf16 %v807_v50, %v744_v4  ;;  %v538_v48 = vpack.c.bf16 %v803_v49, %v740_v2 }
  0x99   :  { %v222_v52 = vpop.permute.xlu0 %221 }
  0x9a   :  { %v225_v57 = vsel %vm96_vm4, %v222_v52, %v224_v51  ;;  %v229_v58 = vsel %vm96_vm4, %v224_v51, %v222_v52 }
  0x9c   :  { %612 = vrot.lane.b32.xlu0 %v611_v53, %s692_s23  ;;  %v234_v54 = vpop.permute.xlu1 %233 }
  0x9d   :  { %v231_v55 = vpop.permute.xlu0 %230 }
  0x9e   :  { %v235_v59 = vsel %vm107_vm5, %v234_v54, %v231_v55  ;;  %v238_v60 = vsel %vm107_vm5, %v231_v55, %v234_v54 }
  0x9f   :  { %v821_v61 = vsel %vm787_vm6, %v238_v60, %v225_v57  ;;  %v825_v62 = vsel %vm791_vm7, %v235_v59, %v229_v58 }
  0xa0   :  { %632 = vrot.lane.b32.xlu0 %v631_v56, %s697_s29  ;;  %v616_v63 = vpack.i.bf16 %v821_v61, %v825_v62  ;;  %v593_v10 = vpop.permute.xlu1 %592  ;;  %v552_v2 = vpack.c.bf16 %v825_v62, %v738_v1 }
  0xa1   :  { %v595_v11 = vunpack.i.h.bf16 %v593_v10 }
  0xa2   :  { %617 = vrot.lane.b32.xlu1 %v616_v63, %s692_s23 }
  0xa4   :  { %637 = vrot.lane.b32.xlu0 %v636_v3, %s697_s29  ;;  %v598_v12 = vpop.permute.xlu1 %597 }
  0xa5   :  { %v600_v17 = vunpack.i.h.bf16 %v598_v12  ;;  %v599_v18 = vunpack.i.l.bf16 %v598_v12 }
  0xa6   :  { %622 = vrot.lane.b32.xlu1 %v754_v7, %s697_s29  ;;  %v594_v7 = vunpack.i.l.bf16 %v593_v10 }
  0xa7   :  { %v259_v26 = vsel %vm125_vm8, %v600_v17, %v599_v18  ;;  %v262_v27 = vsel %vm125_vm8, %v599_v18, %v600_v17 }
  0xa8   :  { %185 = vrot.lane.b32.xlu0 %v803_v49, %s697_s29  ;;  %v137_v14 = vsel %vm125_vm8, %v595_v11, %v594_v7 }
  0xaa   :  { %627 = vrot.lane.b32.xlu1 %v750_v6, %s697_s29  ;;  %v140_v6 = vsel %vm125_vm8, %v594_v7, %v595_v11 }
  0xac   :  { %306 = vrot.lane.b32.xlu0 %v821_v61, %s697_s29 }
  0xae   :  { %187 = vrot.lane.b32.xlu1 %v807_v50, %s697_s29 }
  0xb0   :  { %355 = vperm.xlu0 %641, %v30_v9   ;;  %v554_v9 = vpack.c.bf16 %v821_v61, %v736_v0  ;;  %v29_v0 = vld [vmem:[%s896_s1] sm:$0xff]  ;;  %s700_s1 = smov [#allocation6]  }
  0xb1   :  { %s514_s6 = sshll.u32 %s700_s1, 4  ;;  %s515_s6 = int_to_ptr.vmem [resolvable:$true] %s514_s6 }
  0xb2   :  { %308 = vrot.lane.b32.xlu1 %v825_v62, %s697_s29  ;;  %s664_s7 = scalar_lea.vmem %s515_s6, 512  ;;  %p669_p9 = scmp.lt.s32.totalorder %s515_s6, %s515_s6 }
  0xb3   :  { %p665_p8 = scmp.ne.s32.totalorder %s515_s6, %s664_s7  ;;  %p670_p10 = scmp.lt.s32.totalorder %s664_s7, %s664_s7 }
  0xb5   :  { %p671_p11 = por %p670_p10, %p669_p9 }
  0xb7   :  { %p672_p12 = pnand %p671_p11, %p665_p8 }
 0x106   :  { %v603_v13 = vpop.permute.xlu0 %602 }
 0x107   :  { %v605_v15 = vunpack.i.h.bf16 %v603_v13  ;;  %v604_v16 = vunpack.i.l.bf16 %v603_v13 }
 0x109   :  { %v126_v19 = vsel %vm125_vm8, %v605_v15, %v604_v16  ;;  %v129_v20 = vsel %vm125_vm8, %v604_v16, %v605_v15 }
 0x10a   :  { %v608_v21 = vpop.permute.xlu0 %607  ;;  %v528_v22 = vpack.c.bf16 %v137_v14, %v126_v19  ;;  %v530_v23 = vpack.c.bf16 %v140_v6, %v129_v20 }
 0x10b   :  { %v610_v24 = vunpack.i.h.bf16 %v608_v21  ;;  %v609_v25 = vunpack.i.l.bf16 %v608_v21 }
 0x10c   :  { %529 = vmatprep.subr.bf16.mxu0 %v528_v22 }
 0x10d   :  { %531 = vmatpush1.bf16.msra.mxu0 %v530_v23  ;;  %v248_v28 = vsel %vm125_vm8, %v610_v24, %v609_v25  ;;  %v251_v29 = vsel %vm125_vm8, %v609_v25, %v610_v24 }
 0x10e   :  { %v613_v30 = vpop.permute.xlu0 %612  ;;  %v544_v31 = vpack.c.bf16 %v259_v26, %v248_v28  ;;  %v546_v32 = vpack.c.bf16 %v262_v27, %v251_v29 }
 0x10f   :  { %v615_v35 = vunpack.i.h.bf16 %v613_v30  ;;  %v614_v36 = vunpack.i.l.bf16 %v613_v30 }
 0x110   :  { %545 = vmatprep.subr.bf16.mxu1 %v544_v31 }
 0x111   :  { %547 = vmatpush1.bf16.msra.mxu1 %v546_v32  ;;  %v150_v37 = vsel %vm125_vm8, %v615_v35, %v614_v36  ;;  %v153_v40 = vsel %vm125_vm8, %v614_v36, %v615_v35 }
 0x112   :  { %v633_v41 = vpop.permute.xlu0 %632  ;;  %v532_v42 = vpack.c.bf16 %v776_v34, %v150_v37  ;;  %v534_v43 = vpack.c.bf16 %v774_v33, %v153_v40 }
 0x113   :  { %v635_v51 = vunpack.i.h.bf16 %v633_v41  ;;  %v634_v52 = vunpack.i.l.bf16 %v633_v41 }
 0x114   :  { %v618_v44 = vpop.permute.xlu1 %617  ;;  %533 = vmatprep.subr.bf16.mxu0 %v532_v42 }
 0x115   :  { %v620_v46 = vunpack.i.h.bf16 %v618_v44  ;;  %v619_v47 = vunpack.i.l.bf16 %v618_v44  ;;  %535 = vmatpush1.bf16.msra.mxu0 %v534_v43  ;;  %v171_v49 = vsel %vm166_vm9, %v635_v51, %v634_v52  ;;  %v167_v60 = vsel %vm166_vm9, %v634_v52, %v635_v51 }
 0x116   :  { %537 = vmatprep.subr.bf16.mxu0 %v536_v45  ;;  %v638_v53 = vpop.permute.xlu0 %637 }
 0x117   :  { %v272_v54 = vsel %vm125_vm8, %v620_v46, %v619_v47  ;;  %v275_v34 = vsel %vm125_vm8, %v619_v47, %v620_v46  ;;  %v640_v57 = vunpack.i.h.bf16 %v638_v53  ;;  %v639_v58 = vunpack.i.l.bf16 %v638_v53 }
 0x118   :  { %v623_v33 = vpop.permute.xlu1 %622  ;;  %v548_v55 = vpack.c.bf16 %v784_v39, %v272_v54  ;;  %v550_v56 = vpack.c.bf16 %v782_v38, %v275_v34 }
 0x119   :  { %v625_v4 = vunpack.i.h.bf16 %v623_v33  ;;  %v624_v50 = vunpack.i.l.bf16 %v623_v33  ;;  %539 = vmatpush1.bf16.msra.mxu0 %v538_v48  ;;  %v292_v1 = vsel %vm166_vm9, %v640_v57, %v639_v58  ;;  %v288_v11 = vsel %vm166_vm9, %v639_v58, %v640_v57 }
 0x11a   :  { %549 = vmatprep.subr.bf16.mxu1 %v548_v55  ;;  %v186_v10 = vpop.permute.xlu0 %185 }
 0x11b   :  { %551 = vmatpush1.bf16.msra.mxu1 %v550_v56  ;;  %v182_v59 = vsel %vm166_vm9, %v625_v4, %v624_v50  ;;  %v178_v39 = vsel %vm166_vm9, %v624_v50, %v625_v4 }
 0x11c   :  { %v628_v38 = vpop.permute.xlu1 %627  ;;  %553 = vmatprep.subr.bf16.mxu1 %v552_v2  ;;  %v540_v63 = vpack.c.bf16 %v182_v59, %v171_v49  ;;  %v542_v3 = vpack.c.bf16 %v178_v39, %v167_v60 }
 0x11d   :  { %v630_v5 = vunpack.i.h.bf16 %v628_v38  ;;  %v629_v8 = vunpack.i.l.bf16 %v628_v38 }
 0x11e   :  { %541 = vmatprep.subr.bf16.mxu0 %v540_v63  ;;  %v307_v61 = vpop.permute.xlu0 %306 }
 0x11f   :  { %543 = vmatpush1.bf16.msra.mxu0 %v542_v3  ;;  %555 = vmatpush1.bf16.msra.mxu1 %v554_v9  ;;  %v303_v62 = vsel %vm166_vm9, %v630_v5, %v629_v8  ;;  %v299_v7 = vsel %vm166_vm9, %v629_v8, %v630_v5 }
 0x120   :  { %v188_v12 = vpop.permute.xlu1 %187  ;;  %v556_v13 = vpack.c.bf16 %v303_v62, %v292_v1  ;;  %v558_v14 = vpack.c.bf16 %v299_v7, %v288_v11 }
 0x121   :  { %v193_v6 = vsel %vm166_vm9, %v188_v12, %v186_v10  ;;  %v189_v15 = vsel %vm166_vm9, %v186_v10, %v188_v12 }
 0x122   :  { %378 = vmatprep.subr.mxu0 %v193_v6  ;;  %557 = vmatprep.subr.bf16.mxu1 %v556_v13 }
 0x123   :  { %379 = vmatpush1.msra.mxu0 %v189_v15  ;;  %559 = vmatpush1.bf16.msra.mxu1 %v558_v14 }
 0x124   :  { %v309_v16 = vpop.permute.xlu1 %308  ;;  %526 = vmatmul.mubr.msk.f32.vlgmr.msra.gmra.mrb[0].mxu0 %vm358_vm10, %v29_v0 }
 0x125   :  { %v314_v17 = vsel %vm166_vm9, %v309_v16, %v307_v61  ;;  %v310_v18 = vsel %vm166_vm9, %v307_v61, %v309_v16 }
 0x126   :  { %449 = vmatprep.subr.mxu1 %v314_v17 }
 0x127   :  { %450 = vmatpush1.msra.mxu1 %v310_v18 }
 0x128   :  { %527 = vmatmul.mubr.msk.f32.vlgmr.msra.gmra.mrb[0].mxu1 %vm358_vm10, %v29_v0 }
 0x12f   :  { %v356_v19 = vpop.permute.xlu0 %355 }
 0x1f7   :  { %v428_v20 = vpop.f32.mrb[0].mxu0 }
 0x1f8   :  { %v429_v21 = vadd.f32 %v428_v20, %v356_v19  ;;  %v430_v22 = vpop.f32.mrb[1].mxu0 }
 0x1f9   :  { %v431_v23 = vadd.f32 %v430_v22, %v356_v19 }
 0x1fa   :  { %504 = vst [vmem:[#allocation6] sm:$0xff] %v429_v21 }
 0x1fb   :  { %505 = vst [vmem:[#allocation6 + $0x8] sm:$0xff] %v431_v23  ;;  %v499_v24 = vpop.f32.mrb[0].mxu1 }
 0x1fc   :  { %v500_v25 = vadd.f32 %v499_v24, %v356_v19  ;;  %v501_v26 = vpop.f32.mrb[1].mxu1 }
 0x1fd   :  { %v502_v27 = vadd.f32 %v501_v26, %v356_v19 }
 0x1fe   :  { %507 = vst [vmem:[#allocation6 + $0x10] sm:$0xff] %v500_v25 }
 0x1ff   :  { %508 = vst [vmem:[#allocation6 + $0x18] sm:$0xff] %v502_v27 }
 0x200   :  { %675 = shalt.err (!%p672_p12)
}
 0x201   :  { %s676_s10 = scalar_lea.hbm %s898_s3, 512 }
 0x202   :  { %p677_p13 = scmp.ne.s32.totalorder %s898_s3, %s676_s10  ;;  %p680_p0 = scmp.lt.u32.totalorder %s676_s10, %s898_s3 }
 0x204   :  { %p682_p1 = pnand %p680_p0, %p677_p13 }
 0x206   :  { %685 = shalt.err (!%p682_p1)
}
 0x207   :  { %520 = dma.vmem_to_hbm [thread:$0]  %s515_s6, 512, %s898_s3, [#allocation5], %s691_s22, %s691_s22, %s692_s23  }
 0x208   :  { %688 = dma.done.wait [#allocation5], 512  }
 0x209   :  { %689 = vsyncadd [#allocation5], 4294966784 }
 0x20a   :  { %524 = vsyncpa [#allocation4], 1 }
 0x20b   :  { %525 = vsyncpa [#allocation5], 1 }

</bundles_post_ra>
